<compile_context>
chip_gen: v5e
topology: v5e:2x2
jax: 0.10.0
libtpu: 0.0.40
codegen_flags: <defaults>
</compile_context>

<pallas_src>
import functools

import jax
import jax.numpy as jnp
from jax.experimental import pallas as pl
from jax.experimental.pallas import tpu as pltpu


def _resrnn_kernel(x_ref, wi_ref, b_ref, wh_ref, wf_ref, bf_ref, out_ref, *,
                   res_depth: int, batch: int, lag: int):
    """Whole ResRNN forward in one kernel invocation.

    x_ref : (T*B, I) time-major flattened input           VMEM
    wi_ref: (I, H)   i2h weight
    b_ref : (1, H)   folded bias  (bi + bh)
    wh_ref: (H, H)   h2h weight
    wf_ref: (H, O_pad) fc weight, lane-padded
    bf_ref: (1, O_pad) fc bias, lane-padded
    out_ref: (B, O_pad)
    """
    B, T = batch, lag

    # --- Hoisted input projection: one matmul for every time step + folded bias.
    xw = (jnp.dot(x_ref[...], wi_ref[...], preferred_element_type=jnp.float32)
          + b_ref[...])                                    # (T*B, H)

    wh = wh_ref[...]
    H = wh.shape[0]
    h0 = jnp.zeros((B, H), jnp.float32)   # torch h0 = zeros(1,B,H) -> values == (B,H)
    ht = h0
    hn = None

    # T is static at trace time; the branch structure per step matches the
    # torch `if/elif` chain exactly (minus provably dead work, see comments).
    for i in range(T):
        hn = xw[i * B:(i + 1) * B, :]                      # (B, H) row block for step i
        if i >= 2:
            # At i==0,1 h0 is still the trace-time zeros (torch never updates it
            # at i==0), so the h2h dot would contribute exactly nothing -> skip.
            hn = hn + jnp.dot(h0, wh, preferred_element_type=jnp.float32)

        if i == 0:
            # torch sets hstart = hn here; hstart is only consumed by the final
            # step's h0 = tanh(hn + hstart), which is itself dead (fc uses hn).
            pass
        elif i == T - 1:
            # torch: h0 = tanh(hn + hstart) -- h0 is never read again; skipped.
            pass
        elif res_depth == 1:
            h0 = jnp.tanh(hn + h0)
        elif i % res_depth == 0:
            h0 = jnp.tanh(hn + ht)
            ht = hn
        else:
            h0 = jnp.tanh(hn)

    # fcOutput = fc(hn) -- uses the LAST pre-activation hn, not h0.
    out = jnp.dot(hn, wf_ref[...], preferred_element_type=jnp.float32) + bf_ref[...]
    out_ref[...] = out.astype(out_ref.dtype)


def res_rnn_forward(x, params, res_depth):
    """x: (B, T, I) float32.  params: pre-transposed weights/biases (see init_params)."""
    B, T, I = x.shape
    O = params["wf"].shape[1]
    O_pad = ((O + 127) // 128) * 128   # lane-dense output store (unmasked vst)

    # Time-major flatten so the kernel can hoist all i2h projections into one
    # matmul and slice a contiguous (B, H) row block per step.
    x_tm = jnp.transpose(x, (1, 0, 2)).reshape(T * B, I)
    b_fold = params["bi"] + params["bh"]                   # fold the two biases once
    wf_pad = jnp.pad(params["wf"], ((0, 0), (0, O_pad - O)))
    bf_pad = jnp.pad(params["bf"], ((0, 0), (0, O_pad - O)))

    kern = functools.partial(_resrnn_kernel, res_depth=res_depth, batch=B, lag=T)
    vmem = pl.BlockSpec(memory_space=pltpu.MemorySpace.VMEM)
    out_pad = pl.pallas_call(
        kern,
        out_shape=jax.ShapeDtypeStruct((B, O_pad), jnp.float32),
        in_specs=[vmem] * 6,
        out_specs=vmem,
    )(x_tm, params["wi"], b_fold, params["wh"], wf_pad, bf_pad)
    return out_pad[:, :O]


def _reference_forward(x, params, res_depth):
    """Pure-JAX mirror of the torch forward (no dead-code pruning), for checking."""
    B, T, _ = x.shape
    H = params["wi"].shape[1]
    h0 = jnp.zeros((B, H), jnp.float32)
    ht = h0
    hstart = None
    hn = None
    for i in range(T):
        hn = (x[:, i, :] @ params["wi"] + params["bi"]
              + h0 @ params["wh"] + params["bh"])
        if i == 0:
            hstart = hn
        elif i == T - 1:
            h0 = jnp.tanh(hn + hstart)
        elif res_depth == 1:
            h0 = jnp.tanh(hn + h0)
        elif i % res_depth == 0:
            h0 = jnp.tanh(hn + ht)
            ht = hn
        else:
            h0 = jnp.tanh(hn)
    return hn @ params["wf"] + params["bf"]


def init_params(key, input_dim, hidden_num, output_dim):
    """Deterministic init mimicking torch.nn.Linear (uniform +/- 1/sqrt(fan_in)).

    Weights stored as (in_features, out_features) so the kernel does x @ W.
    h2o / ht2h exist in torch __init__ but are unused in forward -> not materialized.
    """
    ks = jax.random.split(key, 6)

    def lin(kw, kb, fan_in, fan_out):
        bound = 1.0 / jnp.sqrt(fan_in)
        w = jax.random.uniform(kw, (fan_in, fan_out), jnp.float32, -bound, bound)
        b = jax.random.uniform(kb, (1, fan_out), jnp.float32, -bound, bound)
        return w, b

    wi, bi = lin(ks[0], ks[1], input_dim, hidden_num)   # i2h
    wh, bh = lin(ks[2], ks[3], hidden_num, hidden_num)  # h2h
    wf, bf = lin(ks[4], ks[5], hidden_num, output_dim)  # fc
    return {"wi": wi, "bi": bi, "wh": wh, "bh": bh, "wf": wf, "bf": bf}


if __name__ == "__main__":
    B, T, I, H, O = 2, 8, 4, 32, 4

    key = jax.random.PRNGKey(0)
    kx, kp = jax.random.split(key)
    x = jax.random.normal(kx, (B, T, I), jnp.float32)
    params = init_params(kp, I, H, O)

    # Primary run (resDepth=2), plus extra resDepth configs to cover all branches.
    out = jax.block_until_ready(res_rnn_forward(x, params, 2))
    ref = _reference_forward(x, params, 2)
    assert out.shape == (B, O)
    assert jnp.allclose(out, ref, atol=1e-5, rtol=1e-5), (out, ref)

    for rd in (1, 3):
        o = jax.block_until_ready(res_rnn_forward(x, params, rd))
        r = _reference_forward(x, params, rd)
        assert jnp.allclose(o, r, atol=1e-5, rtol=1e-5), (rd, o, r)

    print("KERNEL_OK")
</pallas_src>

<mosaic_0001>
module attributes {stable_mosaic.version = 11 : i64} {
  func.func @_resrnn_kernel(%arg0: memref<16x4xf32, #tpu.memory_space<vmem>>, %arg1: memref<4x32xf32, #tpu.memory_space<vmem>>, %arg2: memref<1x32xf32, #tpu.memory_space<vmem>>, %arg3: memref<32x32xf32, #tpu.memory_space<vmem>>, %arg4: memref<32x128xf32, #tpu.memory_space<vmem>>, %arg5: memref<1x128xf32, #tpu.memory_space<vmem>>, %arg6: memref<2x128xf32, #tpu.memory_space<vmem>>) attributes {dimension_semantics = [], scalar_prefetch = 0 : i64, scratch_operands = 0 : i64, tpu.core_type = #tpu.core_type<tc>} {
    %c0 = arith.constant 0 : index
    %c0_0 = arith.constant 0 : index
    %0 = vector.load %arg0[%c0, %c0_0] : memref<16x4xf32, #tpu.memory_space<vmem>>, vector<16x4xf32>
    %c0_1 = arith.constant 0 : index
    %c0_2 = arith.constant 0 : index
    %1 = vector.load %arg1[%c0_1, %c0_2] : memref<4x32xf32, #tpu.memory_space<vmem>>, vector<4x32xf32>
    %cst = arith.constant dense<0.000000e+00> : vector<16x32xf32>
    %2 = tpu.matmul %0, %1, %cst {dimension_numbers = #tpu.dot_dimension_numbers<[1], [0], [0], [1], [0, 0, 1, 1], [], []>} : vector<16x4xf32>, vector<4x32xf32>, vector<16x32xf32> -> vector<16x32xf32>
    %c0_3 = arith.constant 0 : index
    %c0_4 = arith.constant 0 : index
    %3 = vector.load %arg2[%c0_3, %c0_4] : memref<1x32xf32, #tpu.memory_space<vmem>>, vector<1x32xf32>
    %4 = vector.broadcast %3 : vector<1x32xf32> to vector<16x32xf32>
    %5 = arith.addf %2, %4 : vector<16x32xf32>
    %c0_5 = arith.constant 0 : index
    %c0_6 = arith.constant 0 : index
    %6 = vector.load %arg3[%c0_5, %c0_6] : memref<32x32xf32, #tpu.memory_space<vmem>>, vector<32x32xf32>
    %cst_7 = arith.constant 0.000000e+00 : f32
    %7 = vector.broadcast %cst_7 : f32 to vector<2x32xf32>
    %8 = vector.extract_strided_slice %5 {offsets = [2, 0], sizes = [2, 32], strides = [1, 1]} : vector<16x32xf32> to vector<2x32xf32>
    %9 = math.tanh %8 : vector<2x32xf32>
    %10 = vector.extract_strided_slice %5 {offsets = [4, 0], sizes = [2, 32], strides = [1, 1]} : vector<16x32xf32> to vector<2x32xf32>
    %cst_8 = arith.constant dense<0.000000e+00> : vector<2x32xf32>
    %11 = tpu.matmul %9, %6, %cst_8 {dimension_numbers = #tpu.dot_dimension_numbers<[1], [0], [0], [1], [0, 0, 1, 1], [], []>} : vector<2x32xf32>, vector<32x32xf32>, vector<2x32xf32> -> vector<2x32xf32>
    %12 = arith.addf %10, %11 : vector<2x32xf32>
    %13 = arith.addf %12, %7 : vector<2x32xf32>
    %14 = math.tanh %13 : vector<2x32xf32>
    %15 = vector.extract_strided_slice %5 {offsets = [6, 0], sizes = [2, 32], strides = [1, 1]} : vector<16x32xf32> to vector<2x32xf32>
    %cst_9 = arith.constant dense<0.000000e+00> : vector<2x32xf32>
    %16 = tpu.matmul %14, %6, %cst_9 {dimension_numbers = #tpu.dot_dimension_numbers<[1], [0], [0], [1], [0, 0, 1, 1], [], []>} : vector<2x32xf32>, vector<32x32xf32>, vector<2x32xf32> -> vector<2x32xf32>
    %17 = arith.addf %15, %16 : vector<2x32xf32>
    %18 = math.tanh %17 : vector<2x32xf32>
    %19 = vector.extract_strided_slice %5 {offsets = [8, 0], sizes = [2, 32], strides = [1, 1]} : vector<16x32xf32> to vector<2x32xf32>
    %cst_10 = arith.constant dense<0.000000e+00> : vector<2x32xf32>
    %20 = tpu.matmul %18, %6, %cst_10 {dimension_numbers = #tpu.dot_dimension_numbers<[1], [0], [0], [1], [0, 0, 1, 1], [], []>} : vector<2x32xf32>, vector<32x32xf32>, vector<2x32xf32> -> vector<2x32xf32>
    %21 = arith.addf %19, %20 : vector<2x32xf32>
    %22 = arith.addf %21, %12 : vector<2x32xf32>
    %23 = math.tanh %22 : vector<2x32xf32>
    %24 = vector.extract_strided_slice %5 {offsets = [10, 0], sizes = [2, 32], strides = [1, 1]} : vector<16x32xf32> to vector<2x32xf32>
    %cst_11 = arith.constant dense<0.000000e+00> : vector<2x32xf32>
    %25 = tpu.matmul %23, %6, %cst_11 {dimension_numbers = #tpu.dot_dimension_numbers<[1], [0], [0], [1], [0, 0, 1, 1], [], []>} : vector<2x32xf32>, vector<32x32xf32>, vector<2x32xf32> -> vector<2x32xf32>
    %26 = arith.addf %24, %25 : vector<2x32xf32>
    %27 = math.tanh %26 : vector<2x32xf32>
    %28 = vector.extract_strided_slice %5 {offsets = [12, 0], sizes = [2, 32], strides = [1, 1]} : vector<16x32xf32> to vector<2x32xf32>
    %cst_12 = arith.constant dense<0.000000e+00> : vector<2x32xf32>
    %29 = tpu.matmul %27, %6, %cst_12 {dimension_numbers = #tpu.dot_dimension_numbers<[1], [0], [0], [1], [0, 0, 1, 1], [], []>} : vector<2x32xf32>, vector<32x32xf32>, vector<2x32xf32> -> vector<2x32xf32>
    %30 = arith.addf %28, %29 : vector<2x32xf32>
    %31 = arith.addf %30, %21 : vector<2x32xf32>
    %32 = math.tanh %31 : vector<2x32xf32>
    %33 = vector.extract_strided_slice %5 {offsets = [14, 0], sizes = [2, 32], strides = [1, 1]} : vector<16x32xf32> to vector<2x32xf32>
    %cst_13 = arith.constant dense<0.000000e+00> : vector<2x32xf32>
    %34 = tpu.matmul %32, %6, %cst_13 {dimension_numbers = #tpu.dot_dimension_numbers<[1], [0], [0], [1], [0, 0, 1, 1], [], []>} : vector<2x32xf32>, vector<32x32xf32>, vector<2x32xf32> -> vector<2x32xf32>
    %35 = arith.addf %33, %34 : vector<2x32xf32>
    %c0_14 = arith.constant 0 : index
    %c0_15 = arith.constant 0 : index
    %36 = vector.load %arg4[%c0_14, %c0_15] : memref<32x128xf32, #tpu.memory_space<vmem>>, vector<32x128xf32>
    %cst_16 = arith.constant dense<0.000000e+00> : vector<2x128xf32>
    %37 = tpu.matmul %35, %36, %cst_16 {dimension_numbers = #tpu.dot_dimension_numbers<[1], [0], [0], [1], [0, 0, 1, 1], [], []>} : vector<2x32xf32>, vector<32x128xf32>, vector<2x128xf32> -> vector<2x128xf32>
    %c0_17 = arith.constant 0 : index
    %c0_18 = arith.constant 0 : index
    %38 = vector.load %arg5[%c0_17, %c0_18] : memref<1x128xf32, #tpu.memory_space<vmem>>, vector<1x128xf32>
    %39 = vector.broadcast %38 : vector<1x128xf32> to vector<2x128xf32>
    %40 = arith.addf %37, %39 : vector<2x128xf32>
    %c0_19 = arith.constant 0 : index
    %c0_20 = arith.constant 0 : index
    %41 = vector.load %arg6[%c0_19, %c0_20] : memref<2x128xf32, #tpu.memory_space<vmem>>, vector<2x128xf32>
    tpu.vector_store %arg6[%c0_19, %c0_20], %40 {strides = array<i32>} : memref<2x128xf32, #tpu.memory_space<vmem>>, vector<2x128xf32>,
    return
  }
}

</mosaic_0001>

<bundles_post_ra>
// kernel: tpu_custom_call.1
= control target key start
LH: loop header
LB: loop body
LE: loop exit
PB: predicated region body
PF: predicated region fallthrough
CT: control target
= control target key end

     0   :  { %11 = vsyncpa [#allocation3], 0  ;;  %s512_s0 = inlined_call_operand.vmem [shape: f32[16,4], index: 0, kind: input, shape index: {}]   ;;  %s513_s1 = inlined_call_operand.vmem [shape: f32[4,32], index: 1, kind: input, shape index: {}]   ;;  %s514_s2 = inlined_call_operand.vmem [shape: f32[1,32], index: 2, kind: input, shape index: {}]   ;;  %s515_s3 = inlined_call_operand.hbm [shape: f32[32,32], index: 3, kind: input, shape index: {}]   ;;  %s516_s4 = inlined_call_operand.hbm [shape: f32[32,128], index: 4, kind: input, shape index: {}]   ;;  %s517_s5 = inlined_call_operand.vmem [shape: f32[1,128], index: 5, kind: input, shape index: {}]   ;;  %s518_s6 = inlined_call_operand.hbm [shape: f32[2,128], index: 6, kind: output, shape index: {}]  }
   0x1   :  { %12 = vsyncpa [#allocation6], 0 }
   0x2   :  { %13 = vsyncpa [#allocation4], 0  ;;  %s24_s23 = sshll.u32 %s515_s3, 4  ;;  %s439_s24 = smov [#allocation2]   ;;  %s25_s23 = int_to_ptr.hbm [resolvable:$true] %s24_s23 }
   0x3   :  { %s26_s25 = sshll.u32 %s439_s24, 4  ;;  %s37_s28 = sshll.u32 %s516_s4, 4  ;;  %s27_s25 = int_to_ptr.vmem [resolvable:$true] %s26_s25  ;;  %s38_s28 = int_to_ptr.hbm [resolvable:$true] %s37_s28 }
   0x4   :  { %s440_s29 = smov 128   ;;  %s441_s30 = smov 8  }
   0x5   :  { %32 = dma.hbm_to_vmem [thread:$0]  %s25_s23, 512, %s27_s25, [#allocation3], %s440_s29, %s440_s29, %s441_s30  }
   0x6   :  { %s442_s7 = smov [#allocation5]  }
   0x7   :  { %s39_s8 = sshll.u32 %s442_s7, 4  ;;  %s40_s8 = int_to_ptr.vmem [resolvable:$true] %s39_s8 }
   0x8   :  { %45 = dma.hbm_to_vmem [thread:$0]  %s38_s28, 512, %s40_s8, [#allocation6], %s440_s29, %s440_s29, %s441_s30  }
   0x9   :  { %433 = dma.done.wait [#allocation3], 512  }
   0xa   :  { %434 = vsyncadd [#allocation3], 4294966784 }
   0xb   :  { %435 = dma.done.wait [#allocation6], 512  }
   0xc   :  { %436 = vsyncadd [#allocation6], 4294966784  ;;  %vm70_vm0 = vcmask 1043456   ;;  %vm63_vm1 = vcmask 31744   ;;  %v58_v0 = vld [vmem:[%s513_s1] sm:$0xf] }
   0xd   :  { %v56_v1 = vld [vmem:[%s512_s0] sm:$0xff]  ;;  %332 = vmatpush.msk.msra.mxu0 %vm70_vm0, %v58_v0  ;;  %v100_v2 = vld [vmem:[#allocation2 + $0x18] sm:$0xff]  ;;  %v99_v3 = vld [vmem:[#allocation2 + $0x10] sm:$0xff]  ;;  %vm104_vm2 = vcmask 261120   ;;  %s443_s14 = smov [#allocation7]   ;;  %s321_s18 = sshll.u32 %s518_s6, 4  ;;  %s322_s18 = int_to_ptr.hbm [resolvable:$true] %s321_s18 }
   0xe   :  { %333 = vmatmul.msk.f32.vlgmr.msra.gmra.mxu0 %vm63_vm1, %v56_v1  ;;  %119 = vmatpush.msra.mxu1 %v100_v2  ;;  %v98_v4 = vld [vmem:[#allocation2 + $0x8] sm:$0xff]  ;;  %v97_v5 = vld [vmem:[#allocation2] sm:$0xff]  ;;  %v284_v34 = vld [vmem:[#allocation5 + $0x18] sm:$0xff]  ;;  %s319_s15 = sshll.u32 %s443_s14, 4  ;;  %s320_s15 = int_to_ptr.vmem [resolvable:$true] %s319_s15 }
   0xf   :  { %149 = vmatpush.msra.mxu2 %v100_v2  ;;  %178 = vmatpush.msra.mxu3 %v100_v2  ;;  %v347_v6 = vld [vmem:[%s514_s2] ss:$0 sm:$0xff]  ;;  %v57_v16 = vld [vmem:[%s512_s0 + $0x8] sm:$0xff]  ;;  %v283_v35 = vld [vmem:[#allocation5 + $0x10] sm:$0xff] }
  0x10   :  { %120 = vmatpush.msra.mxu1 %v99_v3  ;;  %305 = vmatpush.msrb.mxu0 %v284_v34  ;;  %v282_v36 = vld [vmem:[#allocation5 + $0x8] sm:$0xff]  ;;  %v281_v44 = vld [vmem:[#allocation5] sm:$0xff] }
  0x11   :  { %150 = vmatpush.msra.mxu2 %v99_v3  ;;  %179 = vmatpush.msra.mxu3 %v99_v3  ;;  %v348_v49 = vld [vmem:[%s517_s5] ss:$0 sm:$0xff] }
  0x12   :  { %121 = vmatpush.msra.mxu1 %v98_v4  ;;  %306 = vmatpush.msrb.mxu0 %v283_v35 }
  0x13   :  { %151 = vmatpush.msra.mxu2 %v98_v4  ;;  %180 = vmatpush.msra.mxu3 %v98_v4 }
  0x14   :  { %122 = vmatpush.msra.mxu1 %v97_v5  ;;  %307 = vmatpush.msrb.mxu0 %v282_v36 }
  0x15   :  { %152 = vmatpush.msra.mxu2 %v97_v5  ;;  %181 = vmatpush.msra.mxu3 %v97_v5 }
  0x16   :  { %207 = vmatpush.msrb.mxu1 %v100_v2  ;;  %334 = vmatmul.msk.f32.gmra.mxu0 %vm63_vm1, %v57_v16 }
  0x17   :  { %236 = vmatpush.msrb.mxu2 %v100_v2  ;;  %269 = vmatpush.msrb.mxu3 %v100_v2 }
  0x18   :  { %208 = vmatpush.msrb.mxu1 %v99_v3  ;;  %308 = vmatpush.msrb.mxu0 %v281_v44 }
  0x19   :  { %237 = vmatpush.msrb.mxu2 %v99_v3  ;;  %270 = vmatpush.msrb.mxu3 %v99_v3 }
  0x1a   :  { %209 = vmatpush.msrb.mxu1 %v98_v4 }
  0x1b   :  { %238 = vmatpush.msrb.mxu2 %v98_v4  ;;  %271 = vmatpush.msrb.mxu3 %v98_v4 }
  0x1c   :  { %210 = vmatpush.msrb.mxu1 %v97_v5 }
  0x1d   :  { %239 = vmatpush.msrb.mxu2 %v97_v5  ;;  %272 = vmatpush.msrb.mxu3 %v97_v5 }
  0x8b   :  { %v91_v7 = vpop.f32.mrf.mxu0 }
  0x8c   :  { %v92_v8 = vadd.f32 %v347_v6, %v91_v7 }
  0x8e   :  { %349 = vtanh.f32 %v92_v8 }
  0x93   :  { %v94_v22 = vpop.f32.mrf.mxu0 }
  0x94   :  { %v350_v9 = vpop.eup %349  ;;  %v95_v23 = vadd.f32 %v347_v6, %v94_v22 }
  0x95   :  { %v103_v10 = vrot.slane %v350_v9, 2 }
  0x97   :  { %335 = vmatmul.msk.f32.vlgmr.msra.gmra.mxu1 %vm104_vm2, %v103_v10 }
 0x114   :  { %v124_v11 = vpop.f32.mrf.mxu1 }
 0x115   :  { %v128_v12 = vrot.slane %v124_v11, 4 }
 0x117   :  { %v130_v13 = vadd.f32 %v128_v12, %v92_v8 }
 0x119   :  { %351 = vtanh.f32 %v130_v13  ;;  %v188_v26 = vrot.slane %v130_v13, 4 }
 0x11f   :  { %v352_v14 = vpop.eup %351 }
 0x120   :  { %v134_v15 = vrot.slane %v352_v14, 4 }
 0x122   :  { %336 = vmatmul.msk.f32.vlgmr.msra.gmra.mxu2 %vm104_vm2, %v134_v15 }
 0x1a5   :  { %v154_v17 = vpop.f32.mrf.mxu2 }
 0x1a6   :  { %v158_v18 = vrot.slane %v154_v17, 2 }
 0x1a8   :  { %v160_v19 = vadd.f32 %v158_v18, %v92_v8 }
 0x1aa   :  { %353 = vtanh.f32 %v160_v19 }
 0x1b0   :  { %v354_v20 = vpop.eup %353 }
 0x1b1   :  { %v163_v21 = vrot.slane %v354_v20, 6 }
 0x1b3   :  { %337 = vmatmul.msk.f32.vlgmr.msra.gmra.mxu3 %vm104_vm2, %v163_v21 }
 0x236   :  { %v183_v24 = vpop.f32.mrf.mxu3 }
 0x237   :  { %v186_v25 = vadd.f32 %v183_v24, %v95_v23 }
 0x239   :  { %v190_v27 = vadd.f32 %v188_v26, %v186_v25  ;;  %v249_v39 = vrot.slane %v186_v25, 4 }
 0x23b   :  { %355 = vtanh.f32 %v190_v27 }
 0x241   :  { %v356_v28 = vpop.eup %355 }
 0x242   :  { %338 = vmatmul.msk.f32.vlgmr.msrb.gmra.mxu1 %vm104_vm2, %v356_v28 }
 0x2bf   :  { %v212_v29 = vpop.f32.mrf.mxu1 }
 0x2c0   :  { %v216_v30 = vrot.slane %v212_v29, 6 }
 0x2c2   :  { %v218_v31 = vadd.f32 %v216_v30, %v95_v23 }
 0x2c4   :  { %357 = vtanh.f32 %v218_v31 }
 0x2ca   :  { %v358_v32 = vpop.eup %357 }
 0x2cb   :  { %v221_v33 = vrot.slane %v358_v32, 2 }
 0x2cd   :  { %339 = vmatmul.msk.f32.vlgmr.msrb.gmra.mxu2 %vm104_vm2, %v221_v33 }
 0x350   :  { %v241_v37 = vpop.f32.mrf.mxu2 }
 0x351   :  { %v245_v38 = vrot.slane %v241_v37, 4 }
 0x353   :  { %v247_v40 = vadd.f32 %v245_v38, %v95_v23 }
 0x355   :  { %v251_v41 = vadd.f32 %v249_v39, %v247_v40 }
 0x357   :  { %359 = vtanh.f32 %v251_v41 }
 0x35d   :  { %v360_v42 = vpop.eup %359 }
 0x35e   :  { %v254_v43 = vrot.slane %v360_v42, 4 }
 0x360   :  { %340 = vmatmul.msk.f32.vlgmr.msrb.gmra.mxu3 %vm104_vm2, %v254_v43 }
 0x3e3   :  { %v274_v45 = vpop.f32.mrf.mxu3 }
 0x3e4   :  { %v278_v46 = vrot.slane %v274_v45, 2 }
 0x3e6   :  { %v280_v47 = vadd.f32 %v278_v46, %v95_v23 }
 0x3e8   :  { %v290_v48 = vrot.slane %v280_v47, 6 }
 0x3ea   :  { %341 = vmatmul.msk.f32.vlgmr.msrb.gmra.mxu0 %vm104_vm2, %v290_v48 }
 0x467   :  { %v310_v50 = vpop.f32.mrf.mxu0 }
 0x468   :  { %v311_v51 = vadd.f32 %v348_v49, %v310_v50 }
 0x46a   :  { %313 = vst [vmem:[#allocation7] sm:$0x3] %v311_v51 }
 0x46b   :  { %324 = dma.vmem_to_hbm [thread:$0]  %s320_s15, 32, %s322_s18, [#allocation4]  }
 0x46c   :  { %437 = dma.done.wait [#allocation4], 32  }
 0x46d   :  { %438 = vsyncadd [#allocation4], 4294967264 }
 0x46e   :  { %329 = vsyncpa [#allocation3], 1 }
 0x46f   :  { %330 = vsyncpa [#allocation6], 1 }
 0x470   :  { %331 = vsyncpa [#allocation4], 1 }

</bundles_post_ra>
